<compile_context>
chip_gen: v7x
topology: tpu7x:2x2x1
jax: 0.10.0
libtpu: 0.0.40
codegen_flags: <defaults>
</compile_context>

<pallas_src>
import jax
import jax.numpy as jnp
from jax.experimental import pallas as pl
from jax.experimental.pallas import tpu as pltpu


# ---------------------------------------------------------------------------
# Kernels
# ---------------------------------------------------------------------------

def _kernel_single_bias(x_ref, w_ref, b_ref, o_ref):
    """Whole-K contraction in one step: no accumulator round trip."""
    acc = jnp.dot(x_ref[...], w_ref[...], preferred_element_type=jnp.float32)
    o_ref[...] = (acc + b_ref[...]).astype(o_ref.dtype)


def _kernel_single_nobias(x_ref, w_ref, o_ref):
    o_ref[...] = jnp.dot(x_ref[...], w_ref[...],
                         preferred_element_type=jnp.float32).astype(o_ref.dtype)


def _kernel_acc_bias(x_ref, w_ref, b_ref, o_ref, acc_ref):
    """K-tiled contraction with a resident f32 accumulator (K = grid axis 2)."""
    k = pl.program_id(2)

    @pl.when(k == 0)
    def _():
        acc_ref[...] = jnp.zeros_like(acc_ref)

    acc_ref[...] += jnp.dot(x_ref[...], w_ref[...],
                            preferred_element_type=jnp.float32)

    @pl.when(k == pl.num_programs(2) - 1)
    def _():
        # Bias already f32 (pre-cast at init); added once after the (trivial,
        # world_size=1) allreduce.
        o_ref[...] = (acc_ref[...] + b_ref[...]).astype(o_ref.dtype)


def _kernel_acc_nobias(x_ref, w_ref, o_ref, acc_ref):
    k = pl.program_id(2)

    @pl.when(k == 0)
    def _():
        acc_ref[...] = jnp.zeros_like(acc_ref)

    acc_ref[...] += jnp.dot(x_ref[...], w_ref[...],
                            preferred_element_type=jnp.float32)

    @pl.when(k == pl.num_programs(2) - 1)
    def _():
        o_ref[...] = acc_ref[...].astype(o_ref.dtype)


# ---------------------------------------------------------------------------
# Tiling / VMEM helpers
# ---------------------------------------------------------------------------

def _round_up(x, m):
    return (x + m - 1) // m * m


def _cdiv(a, b):
    return (a + b - 1) // b


def _device_vmem_caps():
    """Returns (scoped vmem limit to request, tile footprint budget)."""
    phys = 64 * 1024 * 1024          # conservative default (v7x per-TC VMEM)
    try:
        phys = int(pltpu.get_tpu_info().vmem_capacity_bytes)
    except Exception:
        pass
    if phys <= 64 * 1024 * 1024:     # v7x: leave headroom for Mosaic internals
        limit = 48 * 1024 * 1024
    else:                            # v5e / v6e: 128 MiB physical
        limit = 100 * 1024 * 1024
    budget = int(limit * 0.85)
    return limit, budget


def _pick_tile(dim, tile_max, granule=128):
    """Largest tile <= tile_max (multiple of `granule`) minimizing padding."""
    d = _round_up(max(int(dim), 1), granule)
    if d <= tile_max:
        return d
    n_blocks = _cdiv(d, tile_max)
    return _round_up(_cdiv(d, n_blocks), granule)


def _pick_tk_tn(K, N, compute_itemsize, budget):
    # Double-buffered weight tile gets ~40% of the tile budget.
    tn_max = 2048 if budget > 64 * 1024 * 1024 else 1024
    tn = _pick_tile(N, tn_max, granule=128)
    w_tile_elems = int(budget * 0.4) // (2 * compute_itemsize)
    tk_max = max(512, (w_tile_elems // max(tn, 1)) // 256 * 256)
    tk_max = min(tk_max, 4096)
    tk = _pick_tile(K, tk_max, granule=128)
    return tk, tn


def prepare_lm_head_params(weight, bias, *, compute_dtype=None, budget=None,
                           tk_max=None, tn_max=None):
    """One-time (init) prep: transpose weight to [K, N], cast, zero-pad to tile
    multiples; pre-cast bias to f32 and pad. Returns (w_kn, bias_f32, tk, tn)."""
    N, K = weight.shape
    if compute_dtype is None:
        compute_dtype = weight.dtype
    if budget is None:
        _, budget = _device_vmem_caps()
    itemsize = jnp.dtype(compute_dtype).itemsize
    tk, tn = _pick_tk_tn(K, N, itemsize, budget)
    if tk_max is not None:
        tk = min(tk, _round_up(int(tk_max), 128))
    if tn_max is not None:
        tn = min(tn, _round_up(int(tn_max), 128))
    Kp = _round_up(K, tk)
    Np = _round_up(N, tn)

    w_kn = weight.astype(compute_dtype).T            # [K, N], one-time transpose
    if (Kp, Np) != (K, N):
        w_kn = jnp.pad(w_kn, ((0, Kp - K), (0, Np - N)))

    b_f32 = None
    if bias is not None:
        b_f32 = bias.astype(jnp.float32).reshape(1, N)
        if Np != N:
            b_f32 = jnp.pad(b_f32, ((0, 0), (0, Np - N)))
    return w_kn, b_f32, tk, tn


# ---------------------------------------------------------------------------
# Forward
# ---------------------------------------------------------------------------

def lm_head_linear(x, w_kn, bias_f32, out_features, *, tk, tn,
                   vmem_limit_bytes=None, vmem_budget=None,
                   out_dtype=None, weight_buffers=2):
    """LM-head linear: x @ W^T (+ bias), with W pre-transposed/padded to [Kp, Np].

    x:        [batch, seq, in_features]
    w_kn:     [Kp, Np]  (compute dtype, padded, from prepare_lm_head_params)
    bias_f32: [1, Np] float32 or None
    """
    B, S, K = x.shape
    Kp, Np = w_kn.shape
    N = out_features
    assert K <= Kp and N <= Np, "weight prep does not match input/output sizes"
    M = B * S

    if out_dtype is None:
        out_dtype = x.dtype
    compute_dtype = w_kn.dtype
    c_item = jnp.dtype(compute_dtype).itemsize
    o_item = jnp.dtype(out_dtype).itemsize
    sub = max(8, 32 // c_item)               # sublane multiple: f32->8, bf16->16

    if vmem_limit_bytes is None or vmem_budget is None:
        limit, budget = _device_vmem_caps()
        vmem_limit_bytes = vmem_limit_bytes or limit
        vmem_budget = vmem_budget or budget

    n_k = Kp // tk

    # tm: single HBM pass over the weight (tm >= M) whenever the footprint fits.
    def _footprint(tm):
        fp = 2 * tm * tk * c_item            # activations, double-buffered
        fp += 2 * tk * tn * c_item           # weight, double-buffered
        fp += 2 * tm * tn * o_item           # output, double-buffered
        fp += 2 * tn * 4                     # bias tile (f32)
        if n_k > 1:
            fp += tm * tn * 4                # f32 accumulator
        return fp

    tm = _round_up(M, sub)
    if _footprint(tm) > vmem_budget:
        tm = 1024
        while tm > sub and _footprint(tm) > vmem_budget:
            tm //= 2
        tm = max(_round_up(tm, sub), sub)
    Mp = _round_up(M, tm)
    n_m = Mp // tm

    # v7x has 2 TensorCores: make sure more than one "parallel" block exists.
    tn_run = tn
    if n_m * (Np // tn_run) < 2 and tn_run >= 256 and tn_run % 256 == 0:
        tn_run //= 2
    n_j = Np // tn_run

    # Per-call activation prep only (weight/bias were padded once at init).
    x2d = x.reshape(M, K).astype(compute_dtype)
    if (Mp, Kp) != (M, K):
        x2d = jnp.pad(x2d, ((0, Mp - M), (0, Kp - K)))

    has_bias = bias_f32 is not None
    operands = (x2d, w_kn) + ((bias_f32,) if has_bias else ())

    if n_k == 1:
        # Whole-K contraction per tile: no accumulator scratch needed.
        kernel = _kernel_single_bias if has_bias else _kernel_single_nobias
        x_bytes = Mp * Kp * c_item
        w_bytes = Kp * Np * c_item
        keep_weight_resident = (w_bytes * n_m) > (x_bytes * n_j)
        if keep_weight_resident:
            # grid (j, i): the weight tile stays resident across the inner M
            # sweep -> exactly one HBM pass over the vocab-sized weight.
            grid = (n_j, n_m)
            x_spec = pl.BlockSpec((tm, Kp), lambda j, i: (i, 0))
            w_spec = pl.BlockSpec((Kp, tn_run), lambda j, i: (0, j))
            b_spec = pl.BlockSpec((1, tn_run), lambda j, i: (0, j))
            o_spec = pl.BlockSpec((tm, tn_run), lambda j, i: (i, j))
            w_passes, x_passes = 1, n_j
        else:
            grid = (n_m, n_j)
            x_spec = pl.BlockSpec((tm, Kp), lambda i, j: (i, 0))
            w_spec = pl.BlockSpec((Kp, tn_run), lambda i, j: (0, j))
            b_spec = pl.BlockSpec((1, tn_run), lambda i, j: (0, j))
            o_spec = pl.BlockSpec((tm, tn_run), lambda i, j: (i, j))
            w_passes, x_passes = n_m, 1
        in_specs = [x_spec, w_spec] + ([b_spec] if has_bias else [])
        scratch_shapes = []
        dim_sem = ("parallel", "parallel")
    else:
        kernel = _kernel_acc_bias if has_bias else _kernel_acc_nobias
        w_spec_kwargs = {}
        if weight_buffers > 2:
            # Only the weight stream is the critical DMA; deepen its pipeline.
            w_spec_kwargs["pipeline_mode"] = pl.Buffered(weight_buffers)
        in_specs = [
            pl.BlockSpec((tm, tk), lambda i, j, k: (i, k)),
            pl.BlockSpec((tk, tn_run), lambda i, j, k: (k, j), **w_spec_kwargs),
        ]
        if has_bias:
            in_specs.append(pl.BlockSpec((1, tn_run), lambda i, j, k: (0, j)))
        grid = (n_m, n_j, n_k)
        o_spec = pl.BlockSpec((tm, tn_run), lambda i, j, k: (i, j))
        scratch_shapes = [pltpu.VMEM((tm, tn_run), jnp.float32)]
        dim_sem = ("parallel", "parallel", "arbitrary")
        w_passes, x_passes = n_m, 1

    cost = pl.CostEstimate(
        flops=2 * M * N * K,
        transcendentals=0,
        bytes_accessed=(x2d.size * c_item * x_passes
                        + w_kn.size * c_item * w_passes
                        + (bias_f32.size * 4 if has_bias else 0)
                        + Mp * Np * o_item),
    )

    out2d = pl.pallas_call(
        kernel,
        out_shape=jax.ShapeDtypeStruct((Mp, Np), out_dtype),
        grid_spec=pltpu.PrefetchScalarGridSpec(
            num_scalar_prefetch=0,
            grid=grid,
            in_specs=in_specs,
            out_specs=o_spec,
            scratch_shapes=scratch_shapes,
        ),
        compiler_params=pltpu.CompilerParams(
            dimension_semantics=dim_sem,
            vmem_limit_bytes=int(vmem_limit_bytes),
        ),
        cost_estimate=cost,
    )(*operands)

    return out2d[:M, :N].reshape(B, S, N)


# ---------------------------------------------------------------------------
# Module wrapper
# ---------------------------------------------------------------------------

class LmHeadLinearAllreducePallas:
    """Minimal stand-in for DeepSpeed's LmHeadLinearAllreduce (INFERENCE mode).

    mp_group=None => tp_world_size=1, tp_index=0: the input shard is the whole
    hidden dim and the inference_all_reduce is a no-op.
    """

    def __init__(self, in_features, out_features, dtype=jnp.float32, mp_group=None,
                 use_bias=True, compute_dtype=None, tk_max=None, tn_max=None,
                 weight_buffers=2):
        self.mp_group = mp_group
        self.tp_world_size = 1          # mp_group is None
        self.tp_index = 0
        self.name = "lm_head"
        self.in_features = in_features
        self.out_features = out_features
        self.weight_buffers = weight_buffers

        # Deterministic parameter init (synthetic; no checkpoint load).
        kw, kb = jax.random.split(jax.random.PRNGKey(42))
        scale = 1.0 / jnp.sqrt(jnp.float32(in_features))
        self.weight = (jax.random.normal(kw, (out_features, in_features), jnp.float32)
                       * scale).astype(dtype)
        self.bias = ((jax.random.normal(kb, (out_features,), jnp.float32) * 0.01)
                     .astype(dtype) if use_bias else None)

        # One-time prep: transpose/cast/pad weight, pre-cast bias to f32, pick
        # generation-appropriate tiles & scoped-VMEM limit.
        # NOTE: activations are cast to compute_dtype (default: weight dtype,
        # e.g. bf16) before the matmul; accumulation is always f32. Pass
        # compute_dtype=jnp.float32 for a bit-faithful f32 reference path.
        self._vmem_limit, self._vmem_budget = _device_vmem_caps()
        self._compute_dtype = (jnp.dtype(compute_dtype) if compute_dtype is not None
                               else self.weight.dtype)
        self._w_kn, self._bias_f32, self._tk, self._tn = prepare_lm_head_params(
            self.weight, self.bias, compute_dtype=self._compute_dtype,
            budget=self._vmem_budget, tk_max=tk_max, tn_max=tn_max)

    def __call__(self, x):
        # get_shard_size / get_shard_size_list with tp_world_size=1:
        # the shard covers the whole hidden dim, offset 0.
        shard_size = self.in_features // self.tp_world_size
        shard_off = self.tp_index * shard_size
        x_shard = x[:, :, shard_off:shard_off + shard_size]
        out = lm_head_linear(
            x_shard, self._w_kn, self._bias_f32, self.out_features,
            tk=self._tk, tn=self._tn,
            vmem_limit_bytes=self._vmem_limit, vmem_budget=self._vmem_budget,
            out_dtype=x.dtype, weight_buffers=self.weight_buffers)
        # TODO(synk): cross-device dist.inference_all_reduce over mp_group
        # (remote-DMA ring via make_async_remote_copy); no-op here since
        # mp_group is None (tp_world_size == 1).
        return out


if __name__ == "__main__":
    # Case 1: f32, tile-aligned shapes, whole-K single-step kernel with bias.
    batch, seq, in_features, out_features = 2, 8, 256, 128
    x = jax.random.normal(jax.random.PRNGKey(0), (batch, seq, in_features),
                          dtype=jnp.float32)
    layer = LmHeadLinearAllreducePallas(in_features, out_features, dtype=jnp.float32)
    out = jax.block_until_ready(layer(x))
    ref = (x.reshape(-1, in_features) @ layer.weight.T + layer.bias)
    ref = ref.reshape(batch, seq, out_features)
    assert out.shape == (batch, seq, out_features)
    assert jnp.allclose(out, ref, atol=1e-4, rtol=1e-4)

    # Case 2: bf16 weights/activations with unaligned M/N/K (padding path),
    # f32 accumulation inside the kernel.
    b2, s2, k2, n2 = 2, 7, 200, 160
    x2 = jax.random.normal(jax.random.PRNGKey(1), (b2, s2, k2),
                           dtype=jnp.float32).astype(jnp.bfloat16)
    layer2 = LmHeadLinearAllreducePallas(k2, n2, dtype=jnp.bfloat16)
    out2 = jax.block_until_ready(layer2(x2))
    ref2 = (x2.astype(jnp.float32).reshape(-1, k2) @ layer2.weight.astype(jnp.float32).T
            + layer2.bias.astype(jnp.float32)).reshape(b2, s2, n2)
    assert out2.shape == (b2, s2, n2)
    assert jnp.allclose(out2.astype(jnp.float32), ref2, atol=2e-2, rtol=2e-2)

    # Case 3: force small tiles so the K grid axis has >1 block
    # (exercises the f32-accumulator kernel path).
    b3, s3, k3, n3 = 2, 8, 512, 384
    x3 = jax.random.normal(jax.random.PRNGKey(2), (b3, s3, k3),
                           dtype=jnp.float32).astype(jnp.bfloat16)
    layer3 = LmHeadLinearAllreducePallas(k3, n3, dtype=jnp.bfloat16,
                                         tk_max=256, tn_max=128)
    out3 = jax.block_until_ready(layer3(x3))
    ref3 = (x3.astype(jnp.float32).reshape(-1, k3) @ layer3.weight.astype(jnp.float32).T
            + layer3.bias.astype(jnp.float32)).reshape(b3, s3, n3)
    assert out3.shape == (b3, s3, n3)
    assert jnp.allclose(out3.astype(jnp.float32), ref3, atol=3e-2, rtol=3e-2)

    # Case 4: no bias -> bias operand dropped from the kernel entirely.
    layer4 = LmHeadLinearAllreducePallas(in_features, out_features,
                                         dtype=jnp.float32, use_bias=False)
    out4 = jax.block_until_ready(layer4(x))
    ref4 = (x.reshape(-1, in_features) @ layer4.weight.T).reshape(batch, seq,
                                                                  out_features)
    assert jnp.allclose(out4, ref4, atol=1e-4, rtol=1e-4)

    print("KERNEL_OK")
</pallas_src>

<mosaic_0001>
module attributes {stable_mosaic.version = 11 : i64} {
  func.func @_kernel_single_bias(%arg0: i32, %arg1: i32, %arg2: memref<16x256xf32, #tpu.memory_space<vmem>>, %arg3: memref<256x128xf32, #tpu.memory_space<vmem>>, %arg4: memref<1x128xf32, #tpu.memory_space<vmem>>, %arg5: memref<16x128xf32, #tpu.memory_space<vmem>>) attributes {dimension_semantics = [#tpu.dimension_semantics<parallel>, #tpu.dimension_semantics<parallel>], iteration_bounds = array<i64: 1, 1>, scalar_prefetch = 0 : i64, scratch_operands = 0 : i64, tpu.core_type = #tpu.core_type<tc>, window_params = [{transform_indices = @transform_0, window_bounds = array<i64: 16, 256>}, {transform_indices = @transform_1, window_bounds = array<i64: 256, 128>}, {transform_indices = @transform_2, window_bounds = array<i64: 1, 128>}, {transform_indices = @transform_3, window_bounds = array<i64: 16, 128>}]} {
    %c0 = arith.constant 0 : index
    %c0_0 = arith.constant 0 : index
    %0 = vector.load %arg2[%c0, %c0_0] : memref<16x256xf32, #tpu.memory_space<vmem>>, vector<16x256xf32>
    %c0_1 = arith.constant 0 : index
    %c0_2 = arith.constant 0 : index
    %1 = vector.load %arg3[%c0_1, %c0_2] : memref<256x128xf32, #tpu.memory_space<vmem>>, vector<256x128xf32>
    %cst = arith.constant dense<0.000000e+00> : vector<16x128xf32>
    %2 = tpu.matmul %0, %1, %cst {dimension_numbers = #tpu.dot_dimension_numbers<[1], [0], [0], [1], [0, 0, 1, 1], [], []>} : vector<16x256xf32>, vector<256x128xf32>, vector<16x128xf32> -> vector<16x128xf32>
    %c0_3 = arith.constant 0 : index
    %c0_4 = arith.constant 0 : index
    %3 = vector.load %arg4[%c0_3, %c0_4] : memref<1x128xf32, #tpu.memory_space<vmem>>, vector<1x128xf32>
    %4 = vector.broadcast %3 : vector<1x128xf32> to vector<16x128xf32>
    %5 = arith.addf %2, %4 : vector<16x128xf32>
    %c0_5 = arith.constant 0 : index
    %c0_6 = arith.constant 0 : index
    %6 = vector.load %arg5[%c0_5, %c0_6] : memref<16x128xf32, #tpu.memory_space<vmem>>, vector<16x128xf32>
    tpu.vector_store %arg5[%c0_5, %c0_6], %5 {strides = array<i32>} : memref<16x128xf32, #tpu.memory_space<vmem>>, vector<16x128xf32>,
    return
  }
  func.func @transform_0(%arg0: i32, %arg1: i32) -> (i32, i32) {
    %c0_i32 = arith.constant 0 : i32
    %c0_i32_0 = arith.constant 0 : i32
    return %arg1, %c0_i32 : i32, i32
  }
  func.func @transform_1(%arg0: i32, %arg1: i32) -> (i32, i32) {
    %c0_i32 = arith.constant 0 : i32
    %c0_i32_0 = arith.constant 0 : i32
    return %c0_i32, %arg0 : i32, i32
  }
  func.func @transform_2(%arg0: i32, %arg1: i32) -> (i32, i32) {
    %c0_i32 = arith.constant 0 : i32
    %c0_i32_0 = arith.constant 0 : i32
    return %c0_i32, %arg0 : i32, i32
  }
  func.func @transform_3(%arg0: i32, %arg1: i32) -> (i32, i32) {
    %c0_i32 = arith.constant 0 : i32
    return %arg1, %arg0 : i32, i32
  }
}

</mosaic_0001>

<bundles_post_ra>
// kernel: tpu_custom_call.1
= control target key start
LH: loop header
LB: loop body
LE: loop exit
PB: predicated region body
PF: predicated region fallthrough
CT: control target
= control target key end

     0   :  { %8 = vsyncpa [#allocation3], 0  ;;  %s419_s0 = inlined_call_operand.hbm [shape: f32[16,256], index: 0, kind: input, shape index: {}]   ;;  %s420_s1 = inlined_call_operand.hbm [shape: f32[256,128], index: 1, kind: input, shape index: {}]   ;;  %s421_s2 = inlined_call_operand.vmem [shape: f32[1,128], index: 2, kind: input, shape index: {}]   ;;  %s422_s3 = inlined_call_operand.hbm [shape: f32[16,128], index: 3, kind: output, shape index: {}]  }
   0x1   :  { %9 = vsyncpa [#allocation6], 0 }
   0x2   :  { %10 = vsyncpa [#allocation4], 0  ;;  %s347_s12 = smov [#allocation2]   ;;  %s275_s16 = scalar_lea.hbm %s419_s0, 512 }
   0x3   :  { %s16_s13 = sshll.u32 %s347_s12, 4  ;;  %p276_p0 = scmp.ne.s32.totalorder %s419_s0, %s275_s16  ;;  %s17_s13 = int_to_ptr.vmem [resolvable:$true] %s16_s13 }
   0x4   :  { %p279_p1 = scmp.lt.u32.totalorder %s275_s16, %s419_s0 }
   0x6   :  { %p281_p2 = pnand %p279_p1, %p276_p0 }
   0x8   :  { %284 = shalt.err (!%p281_p2)
}
   0x9   :  { %s285_s21 = scalar_lea.vmem %s17_s13, 512  ;;  %p290_p4 = scmp.lt.s32.totalorder %s17_s13, %s17_s13 }
   0xa   :  { %p286_p3 = scmp.ne.s32.totalorder %s17_s13, %s285_s21  ;;  %p291_p5 = scmp.lt.s32.totalorder %s285_s21, %s285_s21 }
   0xc   :  { %p292_p6 = por %p291_p5, %p290_p4 }
   0xe   :  { %p293_p7 = pnand %p292_p6, %p286_p3 }
  0x10   :  { %296 = shalt.err (!%p293_p7)
}
  0x11   :  { %s348_s22 = smov 256   ;;  %s349_s23 = smov 16  }
  0x12   :  { %22 = dma.hbm_to_vmem [thread:$0]  %s419_s0, 512, %s17_s13, [#allocation3], %s348_s22, %s348_s22, %s349_s23  }
  0x13   :  { %s350_s26 = smov [#allocation5]   ;;  %s297_s30 = scalar_lea.hbm %s420_s1, 4096 }
  0x14   :  { %s28_s27 = sshll.u32 %s350_s26, 4  ;;  %p298_p8 = scmp.ne.s32.totalorder %s420_s1, %s297_s30  ;;  %s29_s27 = int_to_ptr.vmem [resolvable:$true] %s28_s27 }
  0x15   :  { %p301_p9 = scmp.lt.u32.totalorder %s297_s30, %s420_s1 }
  0x17   :  { %p303_p10 = pnand %p301_p9, %p298_p8 }
  0x19   :  { %306 = shalt.err (!%p303_p10)
}
  0x1a   :  { %s307_s8 = scalar_lea.vmem %s29_s27, 4096  ;;  %p312_p12 = scmp.lt.s32.totalorder %s29_s27, %s29_s27 }
  0x1b   :  { %p308_p11 = scmp.ne.s32.totalorder %s29_s27, %s307_s8  ;;  %p313_p13 = scmp.lt.s32.totalorder %s307_s8, %s307_s8 }
  0x1d   :  { %p314_p0 = por %p313_p13, %p312_p12 }
  0x1f   :  { %p315_p1 = pnand %p314_p0, %p308_p11 }
  0x21   :  { %318 = shalt.err (!%p315_p1)
}
  0x22   :  { %s351_s0 = smov 128   ;;  %s352_s9 = smov 8  }
  0x23   :  { %34 = dma.hbm_to_vmem [thread:$0]  %s420_s1, 4096, %s29_s27, [#allocation6], %s351_s0, %s351_s0, %s352_s9  }
  0x24   :  { %341 = dma.done.wait [#allocation3], 512  }
  0x25   :  { %342 = vsyncadd [#allocation3], 4294966784 }
  0x26   :  { %343 = dma.done.wait [#allocation6], 4096  }
  0x27   :  { %344 = vsyncadd [#allocation6], 4294963200  ;;  %v63_v0 = vld [vmem:[#allocation5 + $0x80] sm:$0xff]  ;;  %v64_v1 = vld [vmem:[#allocation5 + $0x88] sm:$0xff]  ;;  %s353_s13 = smov [#allocation7]  }
  0x28   :  { %v47_v2 = vld [vmem:[#allocation5] sm:$0xff]  ;;  %v220_v3 = vpack.c.bf16 %v64_v1, %v63_v0  ;;  %v48_v4 = vld [vmem:[#allocation5 + $0x8] sm:$0xff]  ;;  %v65_v5 = vld [vmem:[#allocation5 + $0x90] sm:$0xff]  ;;  %s168_s14 = sshll.u32 %s353_s13, 4  ;;  %s169_s14 = int_to_ptr.vmem [resolvable:$true] %s168_s14 }
  0x29   :  { %v66_v6 = vld [vmem:[#allocation5 + $0x98] sm:$0xff]  ;;  %v222_v7 = vpack.c.bf16 %v48_v4, %v47_v2  ;;  %v49_v9 = vld [vmem:[#allocation5 + $0x10] sm:$0xff]  ;;  %v67_v11 = vld [vmem:[#allocation5 + $0xa0] sm:$0xff]  ;;  %s319_s15 = scalar_lea.vmem %s169_s14, 256  ;;  %p324_p3 = scmp.lt.s32.totalorder %s169_s14, %s169_s14 }
  0x2a   :  { %v224_v8 = vpack.c.bf16 %v66_v6, %v65_v5  ;;  %v50_v10 = vld [vmem:[#allocation5 + $0x18] sm:$0xff]  ;;  %221 = vmatprep.subr.bf16.mxu0 %v220_v3  ;;  %252 = vmatprep.subr.bf16.mxu1 %v220_v3  ;;  %v68_v12 = vld [vmem:[#allocation5 + $0xa8] sm:$0xff]  ;;  %v51_v15 = vld [vmem:[#allocation5 + $0x20] sm:$0xff]  ;;  %p320_p2 = scmp.ne.s32.totalorder %s169_s14, %s319_s15  ;;  %p325_p4 = scmp.lt.s32.totalorder %s319_s15, %s319_s15 }
  0x2b   :  { %223 = vmatpush3.bf16.msra.mxu0 %v222_v7  ;;  %260 = vmatpush3.bf16.msra.mxu1 %v222_v7  ;;  %v226_v13 = vpack.c.bf16 %v50_v10, %v49_v9  ;;  %v228_v14 = vpack.c.bf16 %v68_v12, %v67_v11  ;;  %v52_v16 = vld [vmem:[#allocation5 + $0x28] sm:$0xff]  ;;  %v69_v17 = vld [vmem:[#allocation5 + $0xb0] sm:$0xff]  ;;  %v70_v18 = vld [vmem:[#allocation5 + $0xb8] sm:$0xff] }
  0x2c   :  { %225 = vmatprep.subr.bf16.mxu0 %v224_v8  ;;  %253 = vmatprep.subr.bf16.mxu1 %v224_v8  ;;  %v230_v19 = vpack.c.bf16 %v52_v16, %v51_v15  ;;  %v232_v20 = vpack.c.bf16 %v70_v18, %v69_v17  ;;  %v53_v21 = vld [vmem:[#allocation5 + $0x30] sm:$0xff]  ;;  %v54_v22 = vld [vmem:[#allocation5 + $0x38] sm:$0xff]  ;;  %v71_v23 = vld [vmem:[#allocation5 + $0xc0] sm:$0xff]  ;;  %p326_p5 = por %p325_p4, %p324_p3 }
  0x2d   :  { %v72_v24 = vld [vmem:[#allocation5 + $0xc8] sm:$0xff]  ;;  %v46_v26 = vld [vmem:[#allocation2 + $0x18] sm:$0xff]  ;;  %v234_v27 = vpack.c.bf16 %v54_v22, %v53_v21  ;;  %v55_v29 = vld [vmem:[#allocation5 + $0x40] sm:$0xff] }
  0x2e   :  { %v44_v25 = vld [vmem:[#allocation2 + $0x8] sm:$0xff]  ;;  %v236_v28 = vpack.c.bf16 %v72_v24, %v71_v23  ;;  %v73_v31 = vld [vmem:[#allocation5 + $0xd0] sm:$0xff]  ;;  %v74_v32 = vld [vmem:[#allocation5 + $0xd8] sm:$0xff]  ;;  %155 = vmatprep.mubr.f32.mxu1 %v46_v26  ;;  %p327_p6 = pnand %p326_p5, %p320_p2 }
  0x2f   :  { %227 = vmatpush3.bf16.msra.mxu0 %v226_v13  ;;  %261 = vmatpush3.bf16.msra.mxu1 %v226_v13  ;;  %v56_v30 = vld [vmem:[#allocation5 + $0x48] sm:$0xff]  ;;  %v240_v34 = vpack.c.bf16 %v74_v32, %v73_v31  ;;  %v57_v35 = vld [vmem:[#allocation5 + $0x50] sm:$0xff]  ;;  %v58_v36 = vld [vmem:[#allocation5 + $0x58] sm:$0xff] }
  0x30   :  { %229 = vmatprep.subr.bf16.mxu0 %v228_v14  ;;  %254 = vmatprep.subr.bf16.mxu1 %v228_v14  ;;  %v238_v33 = vpack.c.bf16 %v56_v30, %v55_v29  ;;  %v75_v37 = vld [vmem:[#allocation5 + $0xe0] sm:$0xff]  ;;  %v76_v38 = vld [vmem:[#allocation5 + $0xe8] sm:$0xff]  ;;  %v242_v39 = vpack.c.bf16 %v58_v36, %v57_v35  ;;  %v77_v43 = vld [vmem:[#allocation5 + $0xf0] sm:$0xff] }
  0x31   :  { %150 = vmatprep.mubr.f32.mxu0 %v44_v25  ;;  %v244_v40 = vpack.c.bf16 %v76_v38, %v75_v37  ;;  %v59_v41 = vld [vmem:[#allocation5 + $0x60] sm:$0xff]  ;;  %v60_v42 = vld [vmem:[#allocation5 + $0x68] sm:$0xff]  ;;  %v78_v44 = vld [vmem:[#allocation5 + $0xf8] sm:$0xff] }
  0x32   :  { %v246_v45 = vpack.c.bf16 %v60_v42, %v59_v41  ;;  %v248_v46 = vpack.c.bf16 %v78_v44, %v77_v43  ;;  %v61_v47 = vld [vmem:[#allocation5 + $0x70] sm:$0xff]  ;;  %v62_v48 = vld [vmem:[#allocation5 + $0x78] sm:$0xff]  ;;  %v43_v50 = vld [vmem:[#allocation2] sm:$0xff] }
  0x33   :  { %231 = vmatpush3.bf16.msra.mxu0 %v230_v19  ;;  %262 = vmatpush3.bf16.msra.mxu1 %v230_v19  ;;  %v250_v49 = vpack.c.bf16 %v62_v48, %v61_v47  ;;  %v45_v51 = vld [vmem:[#allocation2 + $0x10] sm:$0xff]  ;;  %v181_v54 = vld [vmem:[%s421_s2] ss:$0 sm:$0xff] }
  0x34   :  { %233 = vmatprep.subr.bf16.mxu0 %v232_v20  ;;  %255 = vmatprep.subr.bf16.mxu1 %v232_v20 }
  0x37   :  { %235 = vmatpush3.bf16.msra.mxu0 %v234_v27  ;;  %263 = vmatpush3.bf16.msra.mxu1 %v234_v27 }
  0x38   :  { %237 = vmatprep.subr.bf16.mxu0 %v236_v28  ;;  %256 = vmatprep.subr.bf16.mxu1 %v236_v28 }
  0x3b   :  { %239 = vmatpush3.bf16.msra.mxu0 %v238_v33  ;;  %264 = vmatpush3.bf16.msra.mxu1 %v238_v33 }
  0x3c   :  { %241 = vmatprep.subr.bf16.mxu0 %v240_v34  ;;  %257 = vmatprep.subr.bf16.mxu1 %v240_v34 }
  0x3f   :  { %243 = vmatpush3.bf16.msra.mxu0 %v242_v39  ;;  %265 = vmatpush3.bf16.msra.mxu1 %v242_v39 }
  0x40   :  { %245 = vmatprep.subr.bf16.mxu0 %v244_v40  ;;  %258 = vmatprep.subr.bf16.mxu1 %v244_v40 }
  0x43   :  { %247 = vmatpush3.bf16.msra.mxu0 %v246_v45  ;;  %266 = vmatpush3.bf16.msra.mxu1 %v246_v45 }
  0x44   :  { %249 = vmatprep.subr.bf16.mxu0 %v248_v46  ;;  %259 = vmatprep.subr.bf16.mxu1 %v248_v46 }
  0x47   :  { %251 = vmatpush3.bf16.msra.mxu0 %v250_v49  ;;  %267 = vmatpush3.bf16.msra.mxu1 %v250_v49 }
  0x4a   :  { %151 = vmatmul.mubr.f32.vlgmr.msra.gmra.mrb[0].mxu0 %v43_v50  ;;  %156 = vmatmul.mubr.f32.vlgmr.msra.gmra.mrb[0].mxu1 %v45_v51 }
 0x11d   :  { %v214_v52 = vpop.f32.mrb[0].mxu0  ;;  %v217_v53 = vpop.f32.mrb[0].mxu1 }
 0x11e   :  { %v215_v55 = vpop.f32.mrb[1].mxu0  ;;  %v218_v56 = vpop.f32.mrb[1].mxu1 }
 0x11f   :  { %v216_v57 = vadd.f32 %v215_v55, %v214_v52  ;;  %v219_v58 = vadd.f32 %v218_v56, %v217_v53 }
 0x121   :  { %v153_v59 = vadd.f32 %v216_v57, %v181_v54  ;;  %v158_v60 = vadd.f32 %v219_v58, %v181_v54 }
 0x123   :  { %161 = vst [vmem:[#allocation7] sm:$0xff] %v153_v59  ;;  %162 = vst [vmem:[#allocation7 + $0x8] sm:$0xff] %v158_v60 }
 0x124   :  { %330 = shalt.err (!%p327_p6)
}
 0x125   :  { %s331_s17 = scalar_lea.hbm %s422_s3, 256 }
 0x126   :  { %p332_p7 = scmp.ne.s32.totalorder %s422_s3, %s331_s17  ;;  %p335_p8 = scmp.lt.u32.totalorder %s331_s17, %s422_s3 }
 0x128   :  { %p337_p9 = pnand %p335_p8, %p332_p7 }
 0x12a   :  { %340 = shalt.err (!%p337_p9)
}
 0x12b   :  { %174 = dma.vmem_to_hbm [thread:$0]  %s169_s14, 256, %s422_s3, [#allocation4], %s351_s0, %s351_s0, %s352_s9  }
 0x12c   :  { %345 = dma.done.wait [#allocation4], 256  }
 0x12d   :  { %346 = vsyncadd [#allocation4], 4294967040 }
 0x12e   :  { %178 = vsyncpa [#allocation3], 1 }
 0x12f   :  { %179 = vsyncpa [#allocation6], 1 }
 0x130   :  { %180 = vsyncpa [#allocation4], 1 }

</bundles_post_ra>
